<compile_context>
chip_gen: v5e
topology: v5e:2x2
jax: 0.10.0
libtpu: 0.0.40
codegen_flags: <defaults>
</compile_context>

<pallas_src>
import math

import jax
import jax.numpy as jnp
from jax.experimental import pallas as pl
from jax.experimental.pallas import tpu as pltpu

_LANES = 128
_TARGET_BLOCK_BYTES = 4 * 1024 * 1024   # per-step footprint (eps + y rows)
_VMEM_LIMIT_BYTES = 32 * 1024 * 1024
_MIN_PALLAS_BYTES = 1 << 20             # below this, fused XLA already wins


def _round_up(x, m):
    return ((x + m - 1) // m) * m


def _num_tensorcores():
    """2 TensorCores per chip on v7x, 1 on v5e/v6e (and unknown backends)."""
    try:
        kind = (jax.devices()[0].device_kind or "").lower()
    except Exception:
        return 1
    return 2 if "v7" in kind else 1


def _sublane_multiple(dtype):
    itemsize = jnp.dtype(dtype).itemsize
    return max(8, 32 // max(1, itemsize))   # 8 for f32, 16 for bf16, 32 for int8


def _make_ssq_kernel(block_rows, batch):
    """Masked sum-of-squares over a (block_rows, D) tile into a (1, 1, D) accumulator."""

    def kernel(eps_ref, y_ref, out_ref):
        c = pl.program_id(0)
        r = pl.program_id(1)

        @pl.when(r == 0)
        def _():
            out_ref[...] = jnp.zeros_like(out_ref)

        # Logical (unclamped) block index -> first global batch row of this step.
        block_idx = c * pl.num_programs(1) + r
        row0 = block_idx * block_rows

        eps = eps_ref[...].astype(jnp.float32)            # (block_rows, D)
        y = y_ref[...]

        # Ragged-tail / phantom-block row mask: cheap VPU compare, broadcast over lanes.
        row_ids = jax.lax.broadcasted_iota(jnp.int32, (block_rows, 1), 0)
        valid = row_ids < (batch - row0)                  # (block_rows, 1) bool
        keep = (y != 0.0) & valid                         # fused zero-mask + row mask
        e2 = jnp.where(keep, eps * eps, 0.0)

        # Per-step partial: reduce rows -> (1, D); mostly vreg-wise VPU adds, one
        # small intra-vreg sublane reduce (hidden under the DMA on a mem-bound op).
        out_ref[...] += jnp.sum(e2, axis=0, keepdims=True)[None]

    return kernel


def _masked_ssq_pallas(eps2d, y2d, block_rows, ncores):
    B, D = eps2d.shape
    num_blocks = pl.cdiv(B, block_rows)
    steps_per_core = pl.cdiv(num_blocks, ncores)
    last_block = num_blocks - 1

    def in_map(c, r):
        # Clamp so phantom steps (possible only when ncores > 1 and num_blocks is
        # not a multiple of ncores) never DMA out of bounds; their contribution is
        # masked to zero in-kernel via the row-index mask.
        return (jnp.minimum(c * steps_per_core + r, last_block), 0)

    partials = pl.pallas_call(
        _make_ssq_kernel(block_rows, B),
        out_shape=jax.ShapeDtypeStruct((ncores, 1, D), jnp.float32),
        grid=(ncores, steps_per_core),
        in_specs=[
            pl.BlockSpec((block_rows, D), in_map),   # eps
            pl.BlockSpec((block_rows, D), in_map),   # y (only used for != 0 mask)
        ],
        # Same output block across the reduction axis r => resident accumulator.
        out_specs=pl.BlockSpec((1, 1, D), lambda c, r: (c, 0, 0)),
        compiler_params=pltpu.CompilerParams(
            dimension_semantics=("parallel", "arbitrary"),
            vmem_limit_bytes=_VMEM_LIMIT_BYTES,
        ),
    )(eps2d, y2d)
    return jnp.sum(partials)


def _masked_ssq_jax(eps2d, y2d):
    e = jnp.where(y2d != 0.0, eps2d.astype(jnp.float32), 0.0)
    return jnp.sum(e * e)


def mgd_loss_eye_forward(eps_t, y_t, sigma, *, force_pallas=False, max_block_rows=None):
    """eps_t, y_t: (B, Q, N) float (f32 or bf16); sigma: (1,) float32 parameter."""
    B, Q, N = eps_t.shape
    D = Q * N

    itemsize_e = jnp.dtype(eps_t.dtype).itemsize
    itemsize_y = jnp.dtype(y_t.dtype).itemsize
    in_bytes = eps_t.size * itemsize_e + y_t.size * itemsize_y

    # Copy-free layout: collapse contiguous trailing dims only (no pad, no ravel copy).
    eps2d = eps_t.reshape(B, D)
    y2d = y_t.reshape(B, D)

    # Dtype-aware tiling (bf16 needs sublane multiples of 16).
    sublane = max(_sublane_multiple(eps_t.dtype), _sublane_multiple(y_t.dtype))
    d_lanes = _round_up(D, _LANES)
    bytes_per_row = d_lanes * (itemsize_e + itemsize_y)   # VMEM footprint per batch row
    rows_budget = max(sublane,
                      (_TARGET_BLOCK_BYTES // bytes_per_row) // sublane * sublane)
    if max_block_rows is not None:
        rows_budget = max(sublane, min(rows_budget, _round_up(max_block_rows, sublane)))
    block_rows = B if rows_budget >= B else rows_budget    # full dim escapes the (8,*) rule

    use_pallas = force_pallas or in_bytes >= _MIN_PALLAS_BYTES
    # Guard: if even the minimal double-buffered block would not fit the VMEM budget.
    if 2 * sublane * bytes_per_row > _VMEM_LIMIT_BYTES:
        use_pallas = False   # TODO(synk): also tile the D axis for extreme Q*N sizes.

    if use_pallas:
        ssq = _masked_ssq_pallas(eps2d, y2d, block_rows, _num_tensorcores())
    else:
        ssq = _masked_ssq_jax(eps2d, y2d)

    # Scalar glue (single-element parameter sigma) in plain JAX.
    sp = jax.nn.softplus(sigma.astype(jnp.float32))[0]
    return 0.5 * ssq / (sp * B) + 0.5 * D * (jnp.log(2.0 * jnp.pi) + jnp.log(sp))


def _reference(eps_t, y_t, sigma):
    B, Q, N = eps_t.shape
    D = Q * N
    mask = (y_t != 0.0).astype(jnp.float32)
    e = eps_t.astype(jnp.float32) * mask
    sp = jax.nn.softplus(sigma.astype(jnp.float32))[0]
    ssq = jnp.sum(e * e, axis=(1, 2))
    per_b = 0.5 * ssq / sp + 0.5 * D * (jnp.log(2.0 * jnp.pi) + jnp.log(sp))
    return jnp.mean(per_b)


if __name__ == "__main__":
    key = jax.random.PRNGKey(0)
    k_eps, k_y, k_sig = jax.random.split(key, 3)
    # Deterministic stand-in for nn.Parameter(torch.randn(1)).
    sigma = jax.random.normal(k_sig, (1,), dtype=jnp.float32)

    def make_inputs(B, Q, N, dtype=jnp.float32, thresh=0.3):
        e = jax.random.normal(k_eps, (B, Q, N), dtype=jnp.float32)
        y = jax.random.normal(k_y, (B, Q, N), dtype=jnp.float32)
        y = jnp.where(jnp.abs(y) < thresh, 0.0, y)   # exact zeros exercise the mask
        return e.astype(dtype), y.astype(dtype)

    # 1) Module's nominal small shape (B=2, seq_length Q=8, num_nodes N=16); force the
    #    Pallas path so the kernel is exercised even below the size gate.
    e1, y1 = make_inputs(2, 8, 16)
    out1 = jax.block_until_ready(mgd_loss_eye_forward(e1, y1, sigma, force_pallas=True))
    ref1 = jax.block_until_ready(_reference(e1, y1, sigma))
    assert jnp.allclose(out1, ref1, rtol=1e-4, atol=1e-4), (out1, ref1)

    # 2) Same shape through the default size gate (fused plain-JAX fallback path).
    out1b = jax.block_until_ready(mgd_loss_eye_forward(e1, y1, sigma))
    assert jnp.allclose(out1b, ref1, rtol=1e-4, atol=1e-4), (out1b, ref1)

    # 3) Ragged batch + non-multiple-of-128 feature dim, multi-step accumulation grid.
    e2, y2 = make_inputs(67, 12, 50)
    out2 = jax.block_until_ready(
        mgd_loss_eye_forward(e2, y2, sigma, force_pallas=True, max_block_rows=16))
    ref2 = jax.block_until_ready(_reference(e2, y2, sigma))
    assert jnp.allclose(out2, ref2, rtol=1e-4, atol=1e-4), (out2, ref2)

    # 4) bf16 inputs (halved HBM traffic); accumulation stays f32 inside the kernel.
    e3, y3 = make_inputs(33, 8, 48, dtype=jnp.bfloat16)
    out3 = jax.block_until_ready(
        mgd_loss_eye_forward(e3, y3, sigma, force_pallas=True, max_block_rows=16))
    ref3 = jax.block_until_ready(_reference(e3, y3, sigma))
    assert jnp.allclose(out3, ref3, rtol=2e-2, atol=2e-2), (out3, ref3)

    print("KERNEL_OK")
</pallas_src>

<mosaic_0001>
module attributes {stable_mosaic.version = 11 : i64} {
  func.func @kernel(%arg0: i32, %arg1: i32, %arg2: memref<2x128xf32, #tpu.memory_space<vmem>>, %arg3: memref<2x128xf32, #tpu.memory_space<vmem>>, %arg4: memref<1x1x128xf32, #tpu.memory_space<vmem>>) attributes {dimension_semantics = [#tpu.dimension_semantics<parallel>, #tpu.dimension_semantics<arbitrary>], iteration_bounds = array<i64: 1, 1>, scalar_prefetch = 0 : i64, scratch_operands = 0 : i64, tpu.core_type = #tpu.core_type<tc>, window_params = [{transform_indices = @transform_0, window_bounds = array<i64: 2, 128>}, {transform_indices = @transform_1, window_bounds = array<i64: 2, 128>}, {transform_indices = @transform_2, window_bounds = array<i64: 1, 1, 128>}]} {
    %c0_i32 = arith.constant 0 : i32
    %0 = arith.cmpi eq, %arg1, %c0_i32 : i32
    %1 = arith.extui %0 : i1 to i32
    %c0_i32_0 = arith.constant 0 : i32
    %2 = arith.cmpi ne, %1, %c0_i32_0 : i32
    scf.if %2 {
      %cst_13 = arith.constant 0.000000e+00 : f32
      %25 = vector.broadcast %cst_13 : f32 to vector<1x1x128xf32>
      %c0_14 = arith.constant 0 : index
      %c0_15 = arith.constant 0 : index
      %c0_16 = arith.constant 0 : index
      %26 = vector.load %arg4[%c0_14, %c0_15, %c0_16] : memref<1x1x128xf32, #tpu.memory_space<vmem>>, vector<1x1x128xf32>
      tpu.vector_store %arg4[%c0_14, %c0_15, %c0_16], %25 {strides = array<i32>} : memref<1x1x128xf32, #tpu.memory_space<vmem>>, vector<1x1x128xf32>,
    } else {
    }
    %c1_i32 = arith.constant 1 : i32
    %3 = arith.muli %arg0, %c1_i32 : i32
    %4 = arith.addi %3, %arg1 : i32
    %c2_i32 = arith.constant 2 : i32
    %5 = arith.muli %4, %c2_i32 : i32
    %c0 = arith.constant 0 : index
    %c0_1 = arith.constant 0 : index
    %6 = vector.load %arg2[%c0, %c0_1] : memref<2x128xf32, #tpu.memory_space<vmem>>, vector<2x128xf32>
    %c0_2 = arith.constant 0 : index
    %c0_3 = arith.constant 0 : index
    %7 = vector.load %arg3[%c0_2, %c0_3] : memref<2x128xf32, #tpu.memory_space<vmem>>, vector<2x128xf32>
    %8 = tpu.iota {dimensions = array<i32: 0>} : vector<2x1xi32>
    %c2_i32_4 = arith.constant 2 : i32
    %9 = arith.subi %c2_i32_4, %5 : i32
    %10 = vector.broadcast %9 : i32 to vector<2x1xi32>
    %11 = arith.cmpi slt, %8, %10 : vector<2x1xi32>
    %cst = arith.constant 0.000000e+00 : f32
    %12 = vector.broadcast %cst : f32 to vector<2x128xf32>
    %13 = arith.cmpf one, %7, %12 : vector<2x128xf32>
    %14 = vector.broadcast %11 : vector<2x1xi1> to vector<2x128xi1>
    %15 = arith.andi %13, %14 : vector<2x128xi1>
    %16 = arith.mulf %6, %6 : vector<2x128xf32>
    %cst_5 = arith.constant 0.000000e+00 : f32
    %17 = vector.broadcast %cst_5 : f32 to vector<2x128xf32>
    %18 = arith.select %15, %16, %17 : vector<2x128xi1>, vector<2x128xf32>
    %c0_6 = arith.constant 0 : index
    %c0_7 = arith.constant 0 : index
    %c0_8 = arith.constant 0 : index
    %19 = vector.load %arg4[%c0_6, %c0_7, %c0_8] : memref<1x1x128xf32, #tpu.memory_space<vmem>>, vector<1x1x128xf32>
    %cst_9 = arith.constant dense<0.000000e+00> : vector<128xf32>
    %20 = vector.multi_reduction <add>, %18, %cst_9 [0] : vector<2x128xf32> to vector<128xf32>
    %21 = vector.shape_cast %20 : vector<128xf32> to vector<1x128xf32>
    %22 = vector.shape_cast %21 : vector<1x128xf32> to vector<1x1x128xf32>
    %23 = arith.addf %19, %22 : vector<1x1x128xf32>
    %c0_10 = arith.constant 0 : index
    %c0_11 = arith.constant 0 : index
    %c0_12 = arith.constant 0 : index
    %24 = vector.load %arg4[%c0_10, %c0_11, %c0_12] : memref<1x1x128xf32, #tpu.memory_space<vmem>>, vector<1x1x128xf32>
    tpu.vector_store %arg4[%c0_10, %c0_11, %c0_12], %23 {strides = array<i32>} : memref<1x1x128xf32, #tpu.memory_space<vmem>>, vector<1x1x128xf32>,
    return
  }
  func.func @transform_0(%arg0: i32, %arg1: i32) -> (i32, i32) {
    %c1_i32 = arith.constant 1 : i32
    %0 = arith.muli %arg0, %c1_i32 : i32
    %1 = arith.addi %0, %arg1 : i32
    %c0_i32 = arith.constant 0 : i32
    %2 = arith.minsi %1, %c0_i32 : i32
    %c0_i32_0 = arith.constant 0 : i32
    %c0_i32_1 = arith.constant 0 : i32
    return %2, %c0_i32_0 : i32, i32
  }
  func.func @transform_1(%arg0: i32, %arg1: i32) -> (i32, i32) {
    %c1_i32 = arith.constant 1 : i32
    %0 = arith.muli %arg0, %c1_i32 : i32
    %1 = arith.addi %0, %arg1 : i32
    %c0_i32 = arith.constant 0 : i32
    %2 = arith.minsi %1, %c0_i32 : i32
    %c0_i32_0 = arith.constant 0 : i32
    %c0_i32_1 = arith.constant 0 : i32
    return %2, %c0_i32_0 : i32, i32
  }
  func.func @transform_2(%arg0: i32, %arg1: i32) -> (i32, i32, i32) {
    %c0_i32 = arith.constant 0 : i32
    %c0_i32_0 = arith.constant 0 : i32
    %c0_i32_1 = arith.constant 0 : i32
    return %arg0, %c0_i32, %c0_i32_0 : i32, i32, i32
  }
}

</mosaic_0001>

<bundles_post_ra>
// kernel: tpu_custom_call.1
= control target key start
LH: loop header
LB: loop body
LE: loop exit
PB: predicated region body
PF: predicated region fallthrough
CT: control target
= control target key end

     0   :  { %7 = vsyncpa [#allocation3], 0  ;;  %s219_s0 = inlined_call_operand.hbm [shape: f32[2,128], index: 0, kind: input, shape index: {}]   ;;  %s220_s1 = inlined_call_operand.hbm [shape: f32[2,128], index: 1, kind: input, shape index: {}]   ;;  %s221_s2 = inlined_call_operand.hbm [shape: f32[1,1,128], index: 2, kind: output, shape index: {}]  }
   0x1   :  { %8 = vsyncpa [#allocation6], 0 }
   0x2   :  { %9 = vsyncpa [#allocation4], 0  ;;  %s20_s11 = sshll.u32 %s219_s0, 4  ;;  %s191_s12 = smov [#allocation2]   ;;  %s21_s11 = int_to_ptr.hbm [resolvable:$true] %s20_s11 }
   0x3   :  { %s22_s13 = sshll.u32 %s191_s12, 4  ;;  %s36_s16 = sshll.u32 %s220_s1, 4  ;;  %s23_s13 = int_to_ptr.vmem [resolvable:$true] %s22_s13  ;;  %s37_s16 = int_to_ptr.hbm [resolvable:$true] %s36_s16 }
   0x4   :  { %25 = dma.hbm_to_vmem [thread:$0]  %s21_s11, 32, %s23_s13, [#allocation3]  }
   0x5   :  { %s192_s17 = smov [#allocation5]  }
   0x6   :  { %s38_s18 = sshll.u32 %s192_s17, 4  ;;  %s39_s18 = int_to_ptr.vmem [resolvable:$true] %s38_s18 }
   0x7   :  { %41 = dma.hbm_to_vmem [thread:$0]  %s37_s16, 32, %s39_s18, [#allocation6]  }
   0x8   :  { %185 = dma.done.wait [#allocation3], 32  }
   0x9   :  { %186 = vsyncadd [#allocation3], 4294967264 }
   0xa   :  { %187 = dma.done.wait [#allocation6], 32  }
   0xb   :  { %188 = vsyncadd [#allocation6], 4294967264  ;;  %v65_v0 = vlaneseq  ;;  %v193_v1 = vmov 0.0   ;;  %v63_v3 = vld [vmem:[#allocation2] sm:$0x3]  ;;  %vm77_vm2 = vcmask 1041408  }
   0xc   :  { %60 = vst [vmem:[#allocation7] sm:$0x1] %v193_v1  ;;  %v64_v4 = vld [vmem:[#allocation5] sm:$0x3]  ;;  %v74_v5 = vmul.f32 %v63_v3, %v63_v3  ;;  %s194_s0 = smov [#allocation7]   ;;  %s94_s21 = sshll.u32 %s221_s2, 4  ;;  %s95_s21 = int_to_ptr.hbm [resolvable:$true] %s94_s21 }
   0xd   :  { %v66_v2 = vshrl.u32 %v65_v0, 7  ;;  %vm70_vm1 = vcmp.ne.f32.partialorder %v64_v4, 0.0  ;;  %s92_s1 = sshll.u32 %s194_s0, 4  ;;  %s93_s1 = int_to_ptr.vmem [resolvable:$true] %s92_s1 }
   0xf   :  { %vm69_vm0 = vcmp.lt.s32.totalorder %v66_v2, 2 }
  0x10   :  { %vm73_vm3 = vmand %vm70_vm1, %vm69_vm0 }
  0x11   :  { %v75_v6 = vsel %vm73_vm3, %v74_v5, 0.0 }
  0x12   :  { %v78_v7 = vsel %vm77_vm2, %v75_v6, 0.0 }
  0x13   :  { %v79_v8 = vrot.slane %v78_v7, 4  ;;  %v76_v13 = vld [vmem:[#allocation7] sm:$0x1] }
  0x15   :  { %v80_v9 = vadd.f32 %v79_v8, %v78_v7 }
  0x17   :  { %v81_v10 = vrot.slane %v80_v9, 2 }
  0x19   :  { %v82_v11 = vadd.f32 %v81_v10, %v80_v9 }
  0x1b   :  { %v83_v12 = vrot.slane %v82_v11, 1 }
  0x1d   :  { %v84_v14 = vadd.f32 %v83_v12, %v82_v11 }
  0x1f   :  { %v85_v15 = vadd.f32 %v84_v14, %v76_v13 }
  0x21   :  { %86 = vst [vmem:[#allocation7] sm:$0x1] %v85_v15 }
  0x22   :  { %97 = dma.vmem_to_hbm [thread:$0]  %s93_s1, 16, %s95_s21, [#allocation4]  }
  0x23   :  { %189 = dma.done.wait [#allocation4], 16  }
  0x24   :  { %190 = vsyncadd [#allocation4], 4294967280 }
  0x25   :  { %102 = vsyncpa [#allocation3], 1 }
  0x26   :  { %103 = vsyncpa [#allocation6], 1 }
  0x27   :  { %104 = vsyncpa [#allocation4], 1 }

</bundles_post_ra>
